<compile_context>
chip_gen: v5e
topology: v5e:2x2
jax: 0.10.0
libtpu: 0.0.40
codegen_flags: <defaults>
</compile_context>

<pallas_src>
import jax
import jax.numpy as jnp
from jax.experimental import pallas as pl
from jax.experimental.pallas import tpu as pltpu

_LANES = 128
_SUBLANES = 8


def _round_up(x: int, m: int) -> int:
    return ((x + m - 1) // m) * m


def _monotonic_loss_kernel(probs_ref, out_ref):
    """One prob_dim tile -> lane-dense partial sums.

    probs_ref: (num_layers, tile_p) VMEM, in the caller's dtype (upcast here)
    out_ref:   (8, 128) f32 VMEM; row 0 holds this step's per-lane partial
               sums, rows 1..7 are zero (summed away in the wrapper).
    """
    p = probs_ref[...].astype(jnp.float32)              # (L, tile_p)
    diffs = p[1:, :] - p[:-1, :]                         # (L-1, tile_p)
    relu = jnp.maximum(diffs, jnp.float32(0.0))

    tile_p = relu.shape[1]
    # Fold the lane axis down to 128 lanes with aligned VPU adds (static unroll).
    acc = relu[:, 0:_LANES]                              # (L-1, 128)
    for k in range(1, tile_p // _LANES):
        acc = acc + relu[:, k * _LANES:(k + 1) * _LANES]

    per_lane = jnp.sum(acc, axis=0, keepdims=True)       # (1, 128) tiny sublane reduce
    row = jax.lax.broadcasted_iota(jnp.int32, (_SUBLANES, _LANES), 0)
    out_ref[...] = jnp.where(row == 0, per_lane, jnp.float32(0.0))


def monotonic_partial_equivariance_loss(
    stacked_probs: jax.Array,
    weight_loss,
    partial_equiv: bool = True,
    *,
    force_pallas: bool = False,
    max_tile_lanes: int = 16384,
    max_block_bytes: int = 2 * 1024 * 1024,
) -> jax.Array:
    """JAX wrapper mirroring MonotonicPartialEquivarianceLoss.forward.

    stacked_probs: [num_layers, prob_dim] array holding the `probs` of each
    GroupConv layer (only layers with non-empty probs are included).
    """
    if not partial_equiv:
        # Mirrors `if not model.module.partial_equiv: return 0.0` (no launch).
        return jnp.float32(0.0)

    assert stacked_probs.ndim == 2 and stacked_probs.shape[0] >= 2, (
        "need at least two GroupConv layers with non-empty probs"
    )
    num_layers, prob_dim = stacked_probs.shape
    weight = jnp.asarray(weight_loss, dtype=jnp.float32)

    # Small-input fast path: a standalone pallas_call is pure launch/DMA
    # overhead at this size; let XLA fuse the 4-op expression instead.
    if not force_pallas and num_layers * prob_dim <= 16384:
        p32 = stacked_probs.astype(jnp.float32)
        return weight * jnp.sum(jnp.maximum(p32[1:] - p32[:-1], 0.0))

    assert max_tile_lanes % _LANES == 0 and max_tile_lanes >= _LANES

    # Lane-dense tile: as big as possible while keeping one (num_layers, tile_p)
    # f32-equivalent block under ~max_block_bytes (double-buffered by Pallas).
    cap_by_bytes = max(
        _LANES, (max_block_bytes // (num_layers * 4)) // _LANES * _LANES
    )
    tile_p = min(_round_up(prob_dim, _LANES), max_tile_lanes, cap_by_bytes)

    # Zero-pad prob_dim to a multiple of the tile; padding is sum-neutral
    # (relu(0 - 0) == 0) and keeps block sizes bounded on every generation.
    prob_dim_pad = _round_up(prob_dim, tile_p)
    if prob_dim_pad != prob_dim:
        stacked_probs = jnp.pad(
            stacked_probs, ((0, 0), (0, prob_dim_pad - prob_dim))
        )
    num_tiles = prob_dim_pad // tile_p

    partials = pl.pallas_call(
        _monotonic_loss_kernel,
        out_shape=jax.ShapeDtypeStruct(
            (num_tiles * _SUBLANES, _LANES), jnp.float32
        ),
        grid=(num_tiles,),
        in_specs=[
            # Native input dtype (bf16 stays bf16 over HBM; upcast in-kernel).
            pl.BlockSpec((num_layers, tile_p), lambda j: (0, j)),
        ],
        # Each grid step owns its private (8,128) output block -> no shared
        # accumulator, so the axis can be sharded across TensorCores.
        out_specs=pl.BlockSpec((_SUBLANES, _LANES), lambda j: (j, 0)),
        compiler_params=pltpu.CompilerParams(
            dimension_semantics=("parallel",),
        ),
    )(stacked_probs)

    # Tiny epilogue: cross-tile/cross-lane sum + weight multiply (weight never
    # touches the kernel, so changing it cannot trigger a Mosaic recompile).
    return weight * jnp.sum(partials)


def _reference_loss(stacked_probs, weight_loss):
    p = stacked_probs.astype(jnp.float32)
    diffs = p[1:] - p[:-1]
    return jnp.float32(weight_loss) * jnp.sum(jnp.maximum(diffs, 0.0))


if __name__ == "__main__":
    key = jax.random.PRNGKey(0)

    # Synthetic "model": 8 GroupConv layers, each with a learned-subset
    # probability vector of length 16 (sigmoid-like values in [0, 1]).
    num_layers, prob_dim, weight_loss = 8, 16, 0.5
    keys = jax.random.split(key, num_layers)
    learned_equivariances = [
        jax.nn.sigmoid(jax.random.normal(k, (prob_dim,), dtype=jnp.float32))
        for k in keys
    ]
    stacked_probs = jnp.stack(learned_equivariances, axis=0)

    # 1) Demo shape through the Pallas kernel (forced past the fast path).
    loss = jax.block_until_ready(
        monotonic_partial_equivariance_loss(
            stacked_probs, weight_loss, force_pallas=True
        )
    )
    ref = _reference_loss(stacked_probs, weight_loss)
    assert jnp.allclose(loss, ref, rtol=1e-5, atol=1e-5), (loss, ref)

    # 2) Multi-tile grid (grid=8) exercising the tiled "parallel" path.
    big = jax.nn.sigmoid(
        jax.random.normal(jax.random.PRNGKey(1), (8, 4096), dtype=jnp.float32)
    )
    loss2 = jax.block_until_ready(
        monotonic_partial_equivariance_loss(big, 1.25, max_tile_lanes=512)
    )
    ref2 = _reference_loss(big, 1.25)
    assert jnp.allclose(loss2, ref2, rtol=1e-3, atol=1e-3), (loss2, ref2)

    # 3) bf16 input, odd layer count, prob_dim not a multiple of 128
    #    (exercises zero-padding + in-kernel upcast + multi-tile grid).
    odd = jax.nn.sigmoid(
        jax.random.normal(jax.random.PRNGKey(2), (5, 1000), dtype=jnp.float32)
    ).astype(jnp.bfloat16)
    loss3 = jax.block_until_ready(
        monotonic_partial_equivariance_loss(
            odd, 0.75, force_pallas=True, max_tile_lanes=256
        )
    )
    ref3 = _reference_loss(odd, 0.75)
    assert jnp.allclose(loss3, ref3, rtol=1e-3, atol=1e-3), (loss3, ref3)

    # 4) Small-input fast path (no kernel launch) agrees with the reference.
    fast = jax.block_until_ready(
        monotonic_partial_equivariance_loss(stacked_probs, weight_loss)
    )
    assert jnp.allclose(fast, ref, rtol=1e-6, atol=1e-6), (fast, ref)

    # 5) Non-partial-equivariant path returns 0.0 (no kernel launch).
    zero = monotonic_partial_equivariance_loss(
        stacked_probs, weight_loss, partial_equiv=False
    )
    assert float(zero) == 0.0

    print("KERNEL_OK")
</pallas_src>

<mosaic_0001>
module attributes {stable_mosaic.version = 11 : i64} {
  func.func @_monotonic_loss_kernel(%arg0: i32, %arg1: memref<8x128xf32, #tpu.memory_space<vmem>>, %arg2: memref<8x128xf32, #tpu.memory_space<vmem>>) attributes {dimension_semantics = [#tpu.dimension_semantics<parallel>], iteration_bounds = array<i64: 1>, scalar_prefetch = 0 : i64, scratch_operands = 0 : i64, tpu.core_type = #tpu.core_type<tc>, window_params = [{transform_indices = @transform_0, window_bounds = array<i64: 8, 128>}, {transform_indices = @transform_1, window_bounds = array<i64: 8, 128>}]} {
    %c0 = arith.constant 0 : index
    %c0_0 = arith.constant 0 : index
    %0 = vector.load %arg1[%c0, %c0_0] : memref<8x128xf32, #tpu.memory_space<vmem>>, vector<8x128xf32>
    %1 = vector.extract_strided_slice %0 {offsets = [1, 0], sizes = [7, 128], strides = [1, 1]} : vector<8x128xf32> to vector<7x128xf32>
    %2 = vector.extract_strided_slice %0 {offsets = [0, 0], sizes = [7, 128], strides = [1, 1]} : vector<8x128xf32> to vector<7x128xf32>
    %3 = arith.subf %1, %2 : vector<7x128xf32>
    %cst = arith.constant 0.000000e+00 : f32
    %4 = vector.broadcast %cst : f32 to vector<7x128xf32>
    %5 = arith.maximumf %3, %4 : vector<7x128xf32>
    %cst_1 = arith.constant dense<0.000000e+00> : vector<128xf32>
    %6 = vector.multi_reduction <add>, %5, %cst_1 [0] : vector<7x128xf32> to vector<128xf32>
    %7 = vector.shape_cast %6 : vector<128xf32> to vector<1x128xf32>
    %8 = tpu.iota {dimensions = array<i32: 0>} : vector<8x128xi32>
    %c0_i32 = arith.constant 0 : i32
    %9 = vector.broadcast %c0_i32 : i32 to vector<8x128xi32>
    %10 = arith.cmpi eq, %8, %9 : vector<8x128xi32>
    %cst_2 = arith.constant 0.000000e+00 : f32
    %11 = vector.shape_cast %7 : vector<1x128xf32> to vector<1x128xf32>
    %12 = vector.broadcast %11 : vector<1x128xf32> to vector<8x128xf32>
    %13 = vector.broadcast %cst_2 : f32 to vector<8x128xf32>
    %14 = arith.select %10, %12, %13 : vector<8x128xi1>, vector<8x128xf32>
    %c0_3 = arith.constant 0 : index
    %c0_4 = arith.constant 0 : index
    %15 = vector.load %arg2[%c0_3, %c0_4] : memref<8x128xf32, #tpu.memory_space<vmem>>, vector<8x128xf32>
    tpu.vector_store %arg2[%c0_3, %c0_4], %14 {strides = array<i32>} : memref<8x128xf32, #tpu.memory_space<vmem>>, vector<8x128xf32>,
    return
  }
  func.func @transform_0(%arg0: i32) -> (i32, i32) {
    %c0_i32 = arith.constant 0 : i32
    %c0_i32_0 = arith.constant 0 : i32
    return %c0_i32, %arg0 : i32, i32
  }
  func.func @transform_1(%arg0: i32) -> (i32, i32) {
    %c0_i32 = arith.constant 0 : i32
    %c0_i32_0 = arith.constant 0 : i32
    return %arg0, %c0_i32 : i32, i32
  }
}

</mosaic_0001>

<bundles_post_ra>
// kernel: tpu_custom_call.1
= control target key start
LH: loop header
LB: loop body
LE: loop exit
PB: predicated region body
PF: predicated region fallthrough
CT: control target
= control target key end

     0   :  { %6 = vsyncpa [#allocation3], 0  ;;  %s134_s0 = inlined_call_operand.hbm [shape: f32[8,128], index: 0, kind: input, shape index: {}]   ;;  %s135_s1 = inlined_call_operand.hbm [shape: f32[8,128], index: 1, kind: output, shape index: {}]  }
   0x1   :  { %7 = vsyncpa [#allocation4], 0  ;;  %s13_s8 = sshll.u32 %s134_s0, 4  ;;  %s116_s9 = smov [#allocation2]   ;;  %s14_s8 = int_to_ptr.hbm [resolvable:$true] %s13_s8 }
   0x2   :  { %s15_s10 = sshll.u32 %s116_s9, 4  ;;  %s16_s10 = int_to_ptr.vmem [resolvable:$true] %s15_s10 }
   0x3   :  { %18 = dma.hbm_to_vmem [thread:$0]  %s14_s8, 128, %s16_s10, [#allocation3]  }
   0x4   :  { %112 = dma.done.wait [#allocation3], 128  }
   0x5   :  { %113 = vsyncadd [#allocation3], 4294967168  ;;  %v23_v0 = vld [vmem:[#allocation2] sm:$0xff]  ;;  %vm32_vm0 = vcmask 1046528   ;;  %v40_v7 = vlaneseq  ;;  %s117_s0 = smov [#allocation5]   ;;  %s52_s14 = sshll.u32 %s135_s1, 4  ;;  %s53_s14 = int_to_ptr.hbm [resolvable:$true] %s52_s14 }
   0x6   :  { %v25_v1 = vrot.slane %v23_v0, 7  ;;  %s50_s11 = sshll.u32 %s117_s0, 4  ;;  %s51_s11 = int_to_ptr.vmem [resolvable:$true] %s50_s11 }
   0x7   :  { %v41_v10 = vshrl.u32 %v40_v7, 7 }
   0x8   :  { %v27_v2 = vsub.f32 %v23_v0, %v25_v1 }
   0x9   :  { %vm42_vm1 = vcmp.eq.s32.totalorder %v41_v10, 0 }
   0xa   :  { %v28_v3 = vmax.f32 %v27_v2, 0.0 }
   0xc   :  { %v30_v4 = vrot.slane %v28_v3, 1 }
   0xe   :  { %v33_v5 = vsel %vm32_vm0, %v30_v4, 0.0 }
   0xf   :  { %v34_v6 = vrot.slane %v33_v5, 4 }
  0x11   :  { %v35_v8 = vadd.f32 %v34_v6, %v33_v5 }
  0x13   :  { %v36_v9 = vrot.slane %v35_v8, 2 }
  0x15   :  { %v37_v11 = vadd.f32 %v36_v9, %v35_v8 }
  0x17   :  { %v38_v12 = vrot.slane %v37_v11, 1 }
  0x19   :  { %v39_v13 = vadd.f32 %v38_v12, %v37_v11 }
  0x1b   :  { %v43_v14 = vsel %vm42_vm1, %v39_v13, 0.0 }
  0x1c   :  { %44 = vst [vmem:[#allocation5] sm:$0xff] %v43_v14 }
  0x1d   :  { %55 = dma.vmem_to_hbm [thread:$0]  %s51_s11, 128, %s53_s14, [#allocation4]  }
  0x1e   :  { %114 = dma.done.wait [#allocation4], 128  }
  0x1f   :  { %115 = vsyncadd [#allocation4], 4294967168 }
  0x20   :  { %60 = vsyncpa [#allocation3], 1 }
  0x21   :  { %61 = vsyncpa [#allocation4], 1 }

</bundles_post_ra>
